<compile_context>
chip_gen: v7x
topology: tpu7x:2x2x1
jax: 0.10.0
libtpu: 0.0.40
codegen_flags: <defaults>
</compile_context>

<pallas_src>
import functools

import jax
import jax.numpy as jnp
from jax.experimental import pallas as pl


def fcnn_f_kernel(x_ref, w1_ref, b1_ref, w2_ref, b2_ref, o_ref, *, K):
    # x_ref:  (Bp, D)   bf16
    # w1_ref: (D, 128)  bf16      b1_ref: (1, 128)  f32
    # w2_ref: (128, Np) bf16      b2_ref: (1, Np)   f32
    # o_ref:  (Bp, Np)  f32   (Np is a multiple of 128 and of K)
    # fc1: bf16 MXU matmul, f32 accumulate; bias + ReLU in f32.
    h = jnp.dot(x_ref[...], w1_ref[...], preferred_element_type=jnp.float32)
    h = jnp.maximum(h + b1_ref[...], 0.0)
    # dropout(p=0.5): identity at inference time.
    # fc2_bayes: bf16 MXU matmul, f32 accumulate; bias in f32.
    logits = jnp.dot(h.astype(jnp.bfloat16), w2_ref[...],
                     preferred_element_type=jnp.float32) + b2_ref[...]
    Bp, Np = o_ref.shape
    # Group-wise softmax over chunks of K columns (== torch softmax dim=2
    # after reshape to (B, K, K)).  Real columns [0, K*K) fall on exact group
    # boundaries; padded groups are all-zero logits -> uniform, dropped later.
    g = logits.reshape(Bp, Np // K, K)
    m = jnp.max(g, axis=-1, keepdims=True)
    e = jnp.exp(g - m)
    denom = jnp.sum(e, axis=-1, keepdims=True)
    p = e * pl.reciprocal(denom, approx=True)
    # Lane-dense store of the flat slab.
    o_ref[...] = p.reshape(Bp, Np)


def fcnn_f_forward(x_nchw, w1, b1, w2, b2, K):
    B = x_nchw.shape[0]
    D = w1.shape[0]
    KK = K * K

    # Pad batch to the 8-sublane granule; pad fc2 width to a multiple of 128
    # lanes that is also a multiple of K (so padded softmax groups are clean).
    Bp = ((B + 7) // 8) * 8
    Np = ((KK + 127) // 128) * 128
    while Np % K:
        Np += 128

    x2d = x_nchw.reshape(B, D).astype(jnp.float32)
    x_p = jnp.zeros((Bp, D), jnp.float32).at[:B].set(x2d).astype(jnp.bfloat16)
    w1_bf = w1.astype(jnp.bfloat16)
    b1_2d = b1.reshape(1, -1).astype(jnp.float32)
    w2_p = (jnp.zeros((w2.shape[0], Np), jnp.float32)
            .at[:, :KK].set(w2).astype(jnp.bfloat16))
    b2_p = jnp.zeros((1, Np), jnp.float32).at[:, :KK].set(b2.reshape(1, -1))

    out_flat = pl.pallas_call(
        functools.partial(fcnn_f_kernel, K=K),
        out_shape=jax.ShapeDtypeStruct((Bp, Np), jnp.float32),
    )(x_p, w1_bf, b1_2d, w2_p, b2_p)

    # Free layout plumbing outside the kernel: drop padding, reshape (B, K, K).
    return out_flat[:B, :KK].reshape(B, K, K)


def init_linear(key, fan_in, fan_out):
    # PyTorch nn.Linear default init: U(-1/sqrt(fan_in), 1/sqrt(fan_in)),
    # weight stored as (in, out) = transpose of torch's (out, in).
    kw, kb = jax.random.split(key)
    bound = 1.0 / jnp.sqrt(jnp.float32(fan_in))
    w = jax.random.uniform(kw, (fan_in, fan_out), jnp.float32, -bound, bound)
    b = jax.random.uniform(kb, (fan_out,), jnp.float32, -bound, bound)
    return w, b


if __name__ == "__main__":
    # x: (B, C, H, W) = (4, 4, 16, 16) -> input_dim = 1024, K = 8 (K*K = 64).
    B, C, H, W = 4, 4, 16, 16
    input_dim = C * H * W
    K = 8

    key = jax.random.PRNGKey(0)
    kx, k1, k2 = jax.random.split(key, 3)
    x = jax.random.normal(kx, (B, C, H, W), jnp.float32)
    w1, b1 = init_linear(k1, input_dim, 128)
    w2, b2 = init_linear(k2, 128, K * K)

    out = jax.block_until_ready(fcnn_f_forward(x, w1, b1, w2, b2, K))

    # sanity: shape and softmax rows ~sum to 1 (approx reciprocal -> loose tol)
    assert out.shape == (B, K, K)
    row_sums = jnp.sum(out, axis=-1)
    assert jnp.allclose(row_sums, jnp.ones_like(row_sums), atol=1e-2)

    # f32 reference; kernel uses bf16 matmul operands + approx reciprocal,
    # so tolerance is looser than a pure-f32 comparison.
    x2d = x.reshape(B, input_dim)
    ref = jax.nn.softmax(
        (jnp.maximum(x2d @ w1 + b1, 0.0) @ w2 + b2).reshape(B, K, K), axis=-1
    )
    assert jnp.allclose(out, ref, atol=2e-2, rtol=2e-2)

    print("KERNEL_OK")
</pallas_src>

<mosaic_0001>
module attributes {stable_mosaic.version = 11 : i64} {
  func.func @fcnn_f_kernel(%arg0: memref<8x1024xbf16, #tpu.memory_space<vmem>>, %arg1: memref<1024x128xbf16, #tpu.memory_space<vmem>>, %arg2: memref<1x128xf32, #tpu.memory_space<vmem>>, %arg3: memref<128x128xbf16, #tpu.memory_space<vmem>>, %arg4: memref<1x128xf32, #tpu.memory_space<vmem>>, %arg5: memref<8x128xf32, #tpu.memory_space<vmem>>) attributes {dimension_semantics = [], scalar_prefetch = 0 : i64, scratch_operands = 0 : i64, tpu.core_type = #tpu.core_type<tc>} {
    %c0 = arith.constant 0 : index
    %c0_0 = arith.constant 0 : index
    %0 = vector.load %arg0[%c0, %c0_0] : memref<8x1024xbf16, #tpu.memory_space<vmem>>, vector<8x1024xbf16>
    %c0_1 = arith.constant 0 : index
    %c0_2 = arith.constant 0 : index
    %1 = vector.load %arg1[%c0_1, %c0_2] : memref<1024x128xbf16, #tpu.memory_space<vmem>>, vector<1024x128xbf16>
    %cst = arith.constant dense<0.000000e+00> : vector<8x128xf32>
    %2 = tpu.matmul %0, %1, %cst {dimension_numbers = #tpu.dot_dimension_numbers<[1], [0], [0], [1], [0, 0, 1, 1], [], []>} : vector<8x1024xbf16>, vector<1024x128xbf16>, vector<8x128xf32> -> vector<8x128xf32>
    %c0_3 = arith.constant 0 : index
    %c0_4 = arith.constant 0 : index
    %3 = vector.load %arg2[%c0_3, %c0_4] : memref<1x128xf32, #tpu.memory_space<vmem>>, vector<1x128xf32>
    %4 = vector.broadcast %3 : vector<1x128xf32> to vector<8x128xf32>
    %5 = arith.addf %2, %4 : vector<8x128xf32>
    %cst_5 = arith.constant 0.000000e+00 : f32
    %6 = vector.broadcast %cst_5 : f32 to vector<8x128xf32>
    %7 = arith.maximumf %5, %6 : vector<8x128xf32>
    %8 = arith.truncf %7 : vector<8x128xf32> to vector<8x128xbf16>
    %c0_6 = arith.constant 0 : index
    %c0_7 = arith.constant 0 : index
    %9 = vector.load %arg3[%c0_6, %c0_7] : memref<128x128xbf16, #tpu.memory_space<vmem>>, vector<128x128xbf16>
    %cst_8 = arith.constant dense<0.000000e+00> : vector<8x128xf32>
    %10 = tpu.matmul %8, %9, %cst_8 {dimension_numbers = #tpu.dot_dimension_numbers<[1], [0], [0], [1], [0, 0, 1, 1], [], []>} : vector<8x128xbf16>, vector<128x128xbf16>, vector<8x128xf32> -> vector<8x128xf32>
    %c0_9 = arith.constant 0 : index
    %c0_10 = arith.constant 0 : index
    %11 = vector.load %arg4[%c0_9, %c0_10] : memref<1x128xf32, #tpu.memory_space<vmem>>, vector<1x128xf32>
    %12 = vector.broadcast %11 : vector<1x128xf32> to vector<8x128xf32>
    %13 = arith.addf %10, %12 : vector<8x128xf32>
    %14 = vector.shape_cast %13 : vector<8x128xf32> to vector<8x16x8xf32>
    %cst_11 = arith.constant dense<0xFF800000> : vector<8x16xf32>
    %15 = vector.multi_reduction <maximumf>, %14, %cst_11 [2] : vector<8x16x8xf32> to vector<8x16xf32>
    %16 = vector.shape_cast %15 : vector<8x16xf32> to vector<8x16x1xf32>
    %17 = vector.broadcast %16 : vector<8x16x1xf32> to vector<8x16x8xf32>
    %18 = arith.subf %14, %17 : vector<8x16x8xf32>
    %19 = math.exp %18 : vector<8x16x8xf32>
    %cst_12 = arith.constant dense<0.000000e+00> : vector<8x16xf32>
    %20 = vector.multi_reduction <add>, %19, %cst_12 [2] : vector<8x16x8xf32> to vector<8x16xf32>
    %21 = vector.shape_cast %20 : vector<8x16xf32> to vector<8x16x1xf32>
    %22 = tpu.reciprocal %21 {approx = true} : vector<8x16x1xf32> -> vector<8x16x1xf32>
    %23 = vector.broadcast %22 : vector<8x16x1xf32> to vector<8x16x8xf32>
    %24 = arith.mulf %19, %23 : vector<8x16x8xf32>
    %25 = vector.shape_cast %24 : vector<8x16x8xf32> to vector<8x128xf32>
    %c0_13 = arith.constant 0 : index
    %c0_14 = arith.constant 0 : index
    %26 = vector.load %arg5[%c0_13, %c0_14] : memref<8x128xf32, #tpu.memory_space<vmem>>, vector<8x128xf32>
    tpu.vector_store %arg5[%c0_13, %c0_14], %25 {strides = array<i32>} : memref<8x128xf32, #tpu.memory_space<vmem>>, vector<8x128xf32>,
    return
  }
}

</mosaic_0001>

<bundles_post_ra>
// kernel: tpu_custom_call.1
= control target key start
LH: loop header
LB: loop body
LE: loop exit
PB: predicated region body
PF: predicated region fallthrough
CT: control target
= control target key end

     0   :  { %10 = vsyncpa [#allocation3], 0  ;;  %s2630_s0 = inlined_call_operand.hbm [shape: bf16[8,1024], index: 0, kind: input, shape index: {}]   ;;  %s2631_s1 = inlined_call_operand.hbm [shape: bf16[1024,128], index: 1, kind: input, shape index: {}]   ;;  %s2632_s2 = inlined_call_operand.vmem [shape: f32[1,128], index: 2, kind: input, shape index: {}]   ;;  %s2633_s3 = inlined_call_operand.hbm [shape: bf16[128,128], index: 3, kind: input, shape index: {}]   ;;  %s2634_s4 = inlined_call_operand.vmem [shape: f32[1,128], index: 4, kind: input, shape index: {}]   ;;  %s2635_s5 = inlined_call_operand.hbm [shape: f32[8,128], index: 5, kind: output, shape index: {}]  }
   0x1   :  { %11 = vsyncpa [#allocation6], 0 }
   0x2   :  { %12 = vsyncpa [#allocation4], 0  ;;  %s2219_s18 = smov [#allocation5]   ;;  %s2125_s22 = scalar_lea.hbm %s2631_s1, 8192 }
   0x3   :  { %s28_s19 = sshll.u32 %s2219_s18, 4  ;;  %p2126_p0 = scmp.ne.s32.totalorder %s2631_s1, %s2125_s22  ;;  %s29_s19 = int_to_ptr.vmem [resolvable:$true] %s28_s19 }
   0x4   :  { %p2129_p1 = scmp.lt.u32.totalorder %s2125_s22, %s2631_s1 }
   0x6   :  { %p2131_p2 = pnand %p2129_p1, %p2126_p0 }
   0x8   :  { %2134 = shalt.err (!%p2131_p2)
}
   0x9   :  { %s2135_s27 = scalar_lea.vmem %s29_s19, 8192  ;;  %p2140_p4 = scmp.lt.s32.totalorder %s29_s19, %s29_s19 }
   0xa   :  { %p2136_p3 = scmp.ne.s32.totalorder %s29_s19, %s2135_s27  ;;  %p2141_p5 = scmp.lt.s32.totalorder %s2135_s27, %s2135_s27 }
   0xc   :  { %p2142_p6 = por %p2141_p5, %p2140_p4 }
   0xe   :  { %p2143_p7 = pnand %p2142_p6, %p2136_p3 }
  0x10   :  { %2146 = shalt.err (!%p2143_p7)
}
  0x11   :  { %s2220_s28 = smov 64   ;;  %s2221_s29 = smov 4  }
  0x12   :  { %34 = dma.hbm_to_vmem [thread:$0]  %s2631_s1, 8192, %s29_s19, [#allocation6], %s2220_s28, %s2220_s28, %s2221_s29  }
  0x13   :  { %s2222_s7 = smov [#allocation2]   ;;  %s2223_s9 = smov [#allocation7]  }
  0x14   :  { %s19_s8 = sshll.u32 %s2222_s7, 4  ;;  %s42_s10 = sshll.u32 %s2223_s9, 4  ;;  %s20_s8 = int_to_ptr.vmem [resolvable:$true] %s19_s8  ;;  %s43_s10 = int_to_ptr.vmem [resolvable:$true] %s42_s10 }
  0x15   :  { %s2147_s13 = scalar_lea.hbm %s2630_s0, 512 }
  0x16   :  { %p2148_p8 = scmp.ne.s32.totalorder %s2630_s0, %s2147_s13  ;;  %p2151_p9 = scmp.lt.u32.totalorder %s2147_s13, %s2630_s0 }
  0x18   :  { %p2153_p10 = pnand %p2151_p9, %p2148_p8 }
  0x1a   :  { %2156 = shalt.err (!%p2153_p10)
}
  0x1b   :  { %s2157_s1 = scalar_lea.vmem %s20_s8, 512  ;;  %p2162_p12 = scmp.lt.s32.totalorder %s20_s8, %s20_s8 }
  0x1c   :  { %p2158_p11 = scmp.ne.s32.totalorder %s20_s8, %s2157_s1  ;;  %p2163_p13 = scmp.lt.s32.totalorder %s2157_s1, %s2157_s1 }
  0x1e   :  { %p2164_p0 = por %p2163_p13, %p2162_p12 }
  0x20   :  { %p2165_p1 = pnand %p2164_p0, %p2158_p11 }
  0x22   :  { %2168 = shalt.err (!%p2165_p1)
}
  0x23   :  { %22 = dma.hbm_to_vmem [thread:$0]  %s2630_s0, 512, %s20_s8, [#allocation3]  }
  0x24   :  { %s2169_s22 = scalar_lea.hbm %s2633_s3, 1024 }
  0x25   :  { %p2170_p2 = scmp.ne.s32.totalorder %s2633_s3, %s2169_s22  ;;  %p2173_p3 = scmp.lt.u32.totalorder %s2169_s22, %s2633_s3 }
  0x27   :  { %p2175_p4 = pnand %p2173_p3, %p2170_p2 }
  0x29   :  { %2178 = shalt.err (!%p2175_p4)
}
  0x2a   :  { %s2179_s27 = scalar_lea.vmem %s43_s10, 1024  ;;  %p2184_p6 = scmp.lt.s32.totalorder %s43_s10, %s43_s10 }
  0x2b   :  { %p2180_p5 = scmp.ne.s32.totalorder %s43_s10, %s2179_s27  ;;  %p2185_p7 = scmp.lt.s32.totalorder %s2179_s27, %s2179_s27 }
  0x2d   :  { %p2186_p8 = por %p2185_p7, %p2184_p6 }
  0x2f   :  { %p2187_p9 = pnand %p2186_p8, %p2180_p5 }
  0x31   :  { %2190 = shalt.err (!%p2187_p9)
}
  0x32   :  { %48 = dma.hbm_to_vmem [thread:$0]  %s2633_s3, 1024, %s43_s10, [#allocation6], %s2220_s28, %s2220_s28, %s2221_s29  }
  0x33   :  { %2213 = dma.done.wait [#allocation3], 512  }
  0x34   :  { %2214 = vsyncadd [#allocation3], 4294966784 }
  0x35   :  { %2215 = dma.done.wait [#allocation6], 9216  }
  0x36   :  { %2216 = vsyncadd [#allocation6], 4294958080  ;;  %v1981_v0 = vld [vmem:[#allocation5 + $0x40] sm:$0xff]   ;;  %v1985_v4 = vld [vmem:[#allocation5 + $0x48] sm:$0xff]   ;;  %vm2225_vm0 = vmmov 0   ;;  %s2226_s7 = smov 104  }
  0x37   :  { %v1982_v1 = vld [vmem:[#allocation5 + $0xc0] sm:$0xff]   ;;  %1840 = vmatprep.subr.bf16.mxu0 %v1981_v0  ;;  %v1986_v5 = vld [vmem:[#allocation5 + $0xc8] sm:$0xff]   ;;  %v1989_v8 = vld [vmem:[#allocation5 + $0x50] sm:$0xff]   ;;  %s2227_s8 = smov 120   ;;  %s2228_s9 = smov 96   ;;  %vm1203_vm1 = vcmask 64512  }
  0x38   :  { %v1983_v2 = vld [vmem:[#allocation5] sm:$0xff]   ;;  %1862 = vmatprep.subr.bf16.mxu1 %v1982_v1  ;;  %v1987_v6 = vld [vmem:[#allocation5 + $0x8] sm:$0xff]   ;;  %v1990_v9 = vld [vmem:[#allocation5 + $0xd0] sm:$0xff]   ;;  %s2229_s10 = smov 112   ;;  %s2231_s11 = smov 88   ;;  %vm1713_vm2 = vcmask 130048  }
  0x39   :  { %v1984_v3 = vld [vmem:[#allocation5 + $0x80] sm:$0xff]   ;;  %1841 = vmatpush3.bf16.msra.mxu0 %v1983_v2  ;;  %v1988_v7 = vld [vmem:[#allocation5 + $0x88] sm:$0xff]   ;;  %v1991_v10 = vld [vmem:[#allocation5 + $0x10] sm:$0xff]   ;;  %s2232_s12 = smov 72   ;;  %s2233_s13 = smov 48   ;;  %vm1715_vm3 = vcmask 195584  }
  0x3a   :  { %1863 = vmatpush3.bf16.msra.mxu1 %v1984_v3  ;;  %1842 = vmatprep.subr.bf16.mxu0 %v1985_v4  ;;  %v1992_v11 = vld [vmem:[#allocation5 + $0x90] sm:$0xff]   ;;  %v1993_v12 = vld [vmem:[#allocation5 + $0x58] sm:$0xff]   ;;  %v1997_v16 = vld [vmem:[#allocation5 + $0x60] sm:$0xff]   ;;  %s2234_s14 = smov 56   ;;  %s2235_s15 = smov 32   ;;  %vm1717_vm4 = vcmask 261120  }
  0x3b   :  { %1864 = vmatprep.subr.bf16.mxu1 %v1986_v5  ;;  %v1994_v13 = vld [vmem:[#allocation5 + $0xd8] sm:$0xff]   ;;  %v1998_v17 = vld [vmem:[#allocation5 + $0xe0] sm:$0xff]   ;;  %v2001_v20 = vld [vmem:[#allocation5 + $0x68] sm:$0xff]   ;;  %s2236_s16 = smov 40   ;;  %s2237_s17 = smov 16   ;;  %vm1719_vm5 = vcmask 326656  }
  0x3c   :  { %v1995_v14 = vld [vmem:[#allocation5 + $0x18] sm:$0xff]   ;;  %v1999_v18 = vld [vmem:[#allocation5 + $0x20] sm:$0xff]   ;;  %v2002_v21 = vld [vmem:[#allocation5 + $0xe8] sm:$0xff]   ;;  %s2238_s1 = smov 24   ;;  %s2239_s18 = smov 8   ;;  %vm1721_vm6 = vcmask 392192  }
  0x3d   :  { %1843 = vmatpush3.bf16.msra.mxu0 %v1987_v6  ;;  %v1996_v15 = vld [vmem:[#allocation5 + $0x98] sm:$0xff]   ;;  %v2000_v19 = vld [vmem:[#allocation5 + $0xa0] sm:$0xff]   ;;  %v2003_v22 = vld [vmem:[#allocation5 + $0x28] sm:$0xff]   ;;  %vm1723_vm7 = vcmask 457728   ;;  %vm1725_vm8 = vcmask 523264   ;;  %vm1727_vm9 = vcmask 588800  }
  0x3e   :  { %1865 = vmatpush3.bf16.msra.mxu1 %v1988_v7  ;;  %1844 = vmatprep.subr.bf16.mxu0 %v1989_v8  ;;  %v2004_v23 = vld [vmem:[#allocation5 + $0xa8] sm:$0xff]   ;;  %v2005_v24 = vld [vmem:[#allocation5 + $0x70] sm:$0xff]   ;;  %v2009_v28 = vld [vmem:[#allocation5 + $0x78] sm:$0xff]   ;;  %vm1729_vm10 = vcmask 654336   ;;  %vm1731_vm11 = vcmask 719872   ;;  %vm1733_vm12 = vcmask 785408  }
  0x3f   :  { %1866 = vmatprep.subr.bf16.mxu1 %v1990_v9  ;;  %v2006_v25 = vld [vmem:[#allocation5 + $0xf0] sm:$0xff]   ;;  %v2010_v29 = vld [vmem:[#allocation5 + $0xf8] sm:$0xff]   ;;  %v61_v32 = vld [vmem:[#allocation2] sm:$0xff]  ;;  %vm1735_vm13 = vcmask 850944   ;;  %vm1737_vm14 = vcmask 916480   ;;  %vm1739_vm15 = vcmask 982016  }
  0x40   :  { %v2007_v26 = vld [vmem:[#allocation5 + $0x30] sm:$0xff]   ;;  %v2011_v30 = vld [vmem:[#allocation5 + $0x38] sm:$0xff]   ;;  %v62_v33 = vld [vmem:[#allocation2 + $0x8] sm:$0xff]  ;;  %v1759_v34 = vcombine.low %v61_v32, %v61_v32  ;;  %v1760_v35 = vcombine.high %v61_v32, %v61_v32 }
  0x41   :  { %1845 = vmatpush3.bf16.msra.mxu0 %v1991_v10  ;;  %v2008_v27 = vld [vmem:[#allocation5 + $0xb0] sm:$0xff]   ;;  %v2012_v31 = vld [vmem:[#allocation5 + $0xb8] sm:$0xff]   ;;  %v1761_v36 = vcombine.low %v62_v33, %v62_v33  ;;  %v1762_v37 = vcombine.high %v62_v33, %v62_v33  ;;  %v2017_v38 = vld [vmem:[#allocation5 + $0x140] sm:$0xff]  }
  0x42   :  { %1867 = vmatpush3.bf16.msra.mxu1 %v1992_v11  ;;  %1846 = vmatprep.subr.bf16.mxu0 %v1993_v12  ;;  %v2018_v39 = vld [vmem:[#allocation5 + $0x1c0] sm:$0xff]   ;;  %v2021_v42 = vld [vmem:[#allocation5 + $0x148] sm:$0xff]   ;;  %v2025_v46 = vld [vmem:[#allocation5 + $0x150] sm:$0xff]  }
  0x43   :  { %1868 = vmatprep.subr.bf16.mxu1 %v1994_v13  ;;  %644 = vmatprep.mubr.bf16.mxu0 %v1760_v35  ;;  %v2019_v40 = vld [vmem:[#allocation5 + $0x100] sm:$0xff]   ;;  %v2022_v43 = vld [vmem:[#allocation5 + $0x1c8] sm:$0xff]   ;;  %v2026_v47 = vld [vmem:[#allocation5 + $0x1d0] sm:$0xff]   ;;  %v2224_v13 = vmov 0.0  }
  0x44   :  { %684 = vmatprep.mubr.bf16.mxu1 %v1762_v37  ;;  %v2020_v41 = vld [vmem:[#allocation5 + $0x180] sm:$0xff]   ;;  %v2023_v44 = vld [vmem:[#allocation5 + $0x108] sm:$0xff]   ;;  %v2027_v48 = vld [vmem:[#allocation5 + $0x110] sm:$0xff]  }
  0x45   :  { %1847 = vmatpush3.bf16.msra.mxu0 %v1995_v14  ;;  %v2024_v45 = vld [vmem:[#allocation5 + $0x188] sm:$0xff]   ;;  %v2028_v49 = vld [vmem:[#allocation5 + $0x190] sm:$0xff]   ;;  %v2029_v50 = vld [vmem:[#allocation5 + $0x158] sm:$0xff]  }
  0x46   :  { %1869 = vmatpush3.bf16.msra.mxu1 %v1996_v15  ;;  %1848 = vmatprep.subr.bf16.mxu0 %v1997_v16  ;;  %v2030_v51 = vld [vmem:[#allocation5 + $0x1d8] sm:$0xff]   ;;  %v2033_v54 = vld [vmem:[#allocation5 + $0x160] sm:$0xff]   ;;  %v2037_v58 = vld [vmem:[#allocation5 + $0x168] sm:$0xff]  }
  0x47   :  { %1870 = vmatprep.subr.bf16.mxu1 %v1998_v17  ;;  %v2031_v52 = vld [vmem:[#allocation5 + $0x118] sm:$0xff]   ;;  %v2034_v55 = vld [vmem:[#allocation5 + $0x1e0] sm:$0xff]   ;;  %v2038_v59 = vld [vmem:[#allocation5 + $0x1e8] sm:$0xff]  }
  0x48   :  { %v2032_v53 = vld [vmem:[#allocation5 + $0x198] sm:$0xff]   ;;  %v2035_v56 = vld [vmem:[#allocation5 + $0x120] sm:$0xff]   ;;  %v2039_v60 = vld [vmem:[#allocation5 + $0x128] sm:$0xff]  }
  0x49   :  { %1849 = vmatpush3.bf16.msra.mxu0 %v1999_v18  ;;  %v2036_v57 = vld [vmem:[#allocation5 + $0x1a0] sm:$0xff]   ;;  %v2040_v61 = vld [vmem:[#allocation5 + $0x1a8] sm:$0xff]   ;;  %v2041_v62 = vld [vmem:[#allocation5 + $0x170] sm:$0xff]  }
  0x4a   :  { %1871 = vmatpush3.bf16.msra.mxu1 %v2000_v19  ;;  %1850 = vmatprep.subr.bf16.mxu0 %v2001_v20  ;;  %v2042_v63 = vld [vmem:[#allocation5 + $0x1f0] sm:$0xff]   ;;  %v2045_v2 = vld [vmem:[#allocation5 + $0x178] sm:$0xff]   ;;  %v2053_v12 = vld [vmem:[#allocation7] sm:$0xff]  }
  0x4b   :  { %1872 = vmatprep.subr.bf16.mxu1 %v2002_v21  ;;  %v2043_v0 = vld [vmem:[#allocation5 + $0x130] sm:$0xff]   ;;  %v2046_v3 = vld [vmem:[#allocation5 + $0x1f8] sm:$0xff]   ;;  %v2054_v14 = vld [vmem:[#allocation7 + $0x8] sm:$0xff]  }
  0x4c   :  { %v2044_v1 = vld [vmem:[#allocation5 + $0x1b0] sm:$0xff]   ;;  %v2047_v4 = vld [vmem:[#allocation5 + $0x138] sm:$0xff]   ;;  %v2057_v17 = vld [vmem:[#allocation7 + $0x20] sm:$0xff]  }
  0x4d   :  { %1851 = vmatpush3.bf16.msra.mxu0 %v2003_v22  ;;  %v2048_v5 = vld [vmem:[#allocation5 + $0x1b8] sm:$0xff]   ;;  %v63_v6 = vld [vmem:[#allocation2 + $0x10] sm:$0xff]  ;;  %v2058_v18 = vld [vmem:[#allocation7 + $0x28] sm:$0xff]  }
  0x4e   :  { %1873 = vmatpush3.bf16.msra.mxu1 %v2004_v23  ;;  %1852 = vmatprep.subr.bf16.mxu0 %v2005_v24  ;;  %v1763_v7 = vcombine.low %v63_v6, %v63_v6  ;;  %v1764_v8 = vcombine.high %v63_v6, %v63_v6  ;;  %v64_v9 = vld [vmem:[#allocation2 + $0x18] sm:$0xff]  ;;  %v2055_v15 = vld [vmem:[#allocation7 + $0x10] sm:$0xff]   ;;  %v1758_v23 = vld [vmem:[%s2632_s2] ss:$0 sm:$0xff] }
  0x4f   :  { %1874 = vmatprep.subr.bf16.mxu1 %v2006_v25  ;;  %v1765_v10 = vcombine.low %v64_v9, %v64_v9  ;;  %v1766_v11 = vcombine.high %v64_v9, %v64_v9  ;;  %v2056_v16 = vld [vmem:[#allocation7 + $0x18] sm:$0xff]   ;;  %v2059_v19 = vld [vmem:[#allocation7 + $0x30] sm:$0xff]  }
  0x50   :  { %v2060_v20 = vld [vmem:[#allocation7 + $0x38] sm:$0xff]  }
  0x51   :  { %1853 = vmatpush3.bf16.msra.mxu0 %v2007_v26 }
  0x52   :  { %1875 = vmatpush3.bf16.msra.mxu1 %v2008_v27  ;;  %1854 = vmatprep.subr.bf16.mxu0 %v2009_v28 }
  0x53   :  { %1876 = vmatprep.subr.bf16.mxu1 %v2010_v29 }
  0x55   :  { %1855 = vmatpush3.bf16.msra.mxu0 %v2011_v30 }
  0x56   :  { %1877 = vmatpush3.bf16.msra.mxu1 %v2012_v31  ;;  %1884 = vmatprep.subr.bf16.mxu0 %v2017_v38 }
  0x57   :  { %1906 = vmatprep.subr.bf16.mxu1 %v2018_v39 }
  0x58   :  { %645 = vmatmul.mubr.bf16.vlgmr.msra.gmra.mrb[0].mxu0 %v1759_v34 }
  0x59   :  { %685 = vmatmul.mubr.bf16.vlgmr.msra.gmra.mrb[0].mxu1 %v1761_v36  ;;  %1885 = vmatpush3.bf16.msra.mxu0 %v2019_v40 }
  0x5a   :  { %1907 = vmatpush3.bf16.msra.mxu1 %v2020_v41  ;;  %1886 = vmatprep.subr.bf16.mxu0 %v2021_v42 }
  0x5b   :  { %1908 = vmatprep.subr.bf16.mxu1 %v2022_v43  ;;  %724 = vmatprep.mubr.bf16.mxu0 %v1764_v8 }
  0x5c   :  { %764 = vmatprep.mubr.bf16.mxu1 %v1766_v11 }
  0x5d   :  { %1887 = vmatpush3.bf16.msra.mxu0 %v2023_v44 }
  0x5e   :  { %1909 = vmatpush3.bf16.msra.mxu1 %v2024_v45  ;;  %1888 = vmatprep.subr.bf16.mxu0 %v2025_v46 }
  0x5f   :  { %1910 = vmatprep.subr.bf16.mxu1 %v2026_v47 }
  0x61   :  { %1889 = vmatpush3.bf16.msra.mxu0 %v2027_v48  ;;  %v1831_v48 = vld [vmem:[%s2634_s4] ss:$0 sm:$0xff]  ;;  %s2230_s4 = smov 80  }
  0x62   :  { %1911 = vmatpush3.bf16.msra.mxu1 %v2028_v49  ;;  %1890 = vmatprep.subr.bf16.mxu0 %v2029_v50 }
  0x63   :  { %1912 = vmatprep.subr.bf16.mxu1 %v2030_v51 }
  0x65   :  { %1891 = vmatpush3.bf16.msra.mxu0 %v2031_v52 }
  0x66   :  { %1913 = vmatpush3.bf16.msra.mxu1 %v2032_v53  ;;  %1892 = vmatprep.subr.bf16.mxu0 %v2033_v54 }
  0x67   :  { %1914 = vmatprep.subr.bf16.mxu1 %v2034_v55 }
  0x69   :  { %1893 = vmatpush3.bf16.msra.mxu0 %v2035_v56  ;;  %v2240_v56 = vmov 1983009808  }
  0x6a   :  { %1915 = vmatpush3.bf16.msra.mxu1 %v2036_v57  ;;  %1894 = vmatprep.subr.bf16.mxu0 %v2037_v58  ;;  %v934_v57 = vunpack.c.l.s4 %v2240_v56  ;;  %v936_v58 = vlaneseq }
  0x6b   :  { %1916 = vmatprep.subr.bf16.mxu1 %v2038_v59 }
  0x6d   :  { %1895 = vmatpush3.bf16.msra.mxu0 %v2039_v60 }
  0x6e   :  { %1917 = vmatpush3.bf16.msra.mxu1 %v2040_v61  ;;  %1896 = vmatprep.subr.bf16.mxu0 %v2041_v62  ;;  %v935_v61 = vunpack.c.0.s8 %v934_v57  ;;  %v937_v62 = vshrl.u32 %v936_v58, 7 }
  0x6f   :  { %1918 = vmatprep.subr.bf16.mxu1 %v2042_v63  ;;  %v2241_v63 = vmov 1934713408  }
  0x71   :  { %1897 = vmatpush3.bf16.msra.mxu0 %v2043_v0  ;;  %v998_v0 = vunpack.c.l.s4 %v2241_v63 }
  0x72   :  { %1919 = vmatpush3.bf16.msra.mxu1 %v2044_v1  ;;  %1898 = vmatprep.subr.bf16.mxu0 %v2045_v2 }
  0x73   :  { %1920 = vmatprep.subr.bf16.mxu1 %v2046_v3  ;;  %v999_v6 = vunpack.c.0.s8 %v998_v0 }
  0x75   :  { %1899 = vmatpush3.bf16.msra.mxu0 %v2047_v4  ;;  %v2354_v4 = vsub.s32 %v935_v61, %v937_v62 }
  0x76   :  { %1921 = vmatpush3.bf16.msra.mxu1 %v2048_v5  ;;  %1937 = vmatprep.subr.bf16.mxu0 %v2224_v13 }
  0x78   :  { %725 = vmatmul.mubr.bf16.vlgmr.msra.gmra.mrb[4].mxu0 %v1763_v7 }
  0x79   :  { %765 = vmatmul.mubr.bf16.vlgmr.msra.gmra.mrb[4].mxu1 %v1765_v10  ;;  %1938 = vmatpush3.bf16.msra.mxu0 %v2053_v12 }
  0x7a   :  { %1939 = vmatprep.subr.bf16.mxu0 %v2224_v13  ;;  %1953 = vmatprep.mubr.msk.bf16.mxu0 %vm2225_vm0, %v2224_v13 }
  0x7d   :  { %1940 = vmatpush3.bf16.msra.mxu0 %v2054_v14 }
  0x7e   :  { %1941 = vmatprep.subr.bf16.mxu0 %v2224_v13 }
  0x81   :  { %1942 = vmatpush3.bf16.msra.mxu0 %v2055_v15 }
  0x82   :  { %1943 = vmatprep.subr.bf16.mxu0 %v2224_v13 }
  0x85   :  { %1944 = vmatpush3.bf16.msra.mxu0 %v2056_v16 }
  0x86   :  { %1945 = vmatprep.subr.bf16.mxu0 %v2224_v13 }
  0x89   :  { %1946 = vmatpush3.bf16.msra.mxu0 %v2057_v17  ;;  %v2361_v17 = vsub.s32 %v999_v6, %v937_v62 }
  0x8a   :  { %1947 = vmatprep.subr.bf16.mxu0 %v2224_v13 }
  0x8d   :  { %1948 = vmatpush3.bf16.msra.mxu0 %v2058_v18 }
  0x8e   :  { %1949 = vmatprep.subr.bf16.mxu0 %v2224_v13 }
  0x91   :  { %1950 = vmatpush3.bf16.msra.mxu0 %v2059_v19 }
  0x92   :  { %1951 = vmatprep.subr.bf16.mxu0 %v2224_v13 }
  0x95   :  { %1952 = vmatpush3.bf16.msra.mxu0 %v2060_v20 }
 0x12b   :  { %v1856_v21 = vpop.f32.mrb[0].mxu0 }
 0x12c   :  { %v1878_v22 = vpop.f32.mrb[0].mxu1  ;;  %v1857_v24 = vpop.f32.mrb[1].mxu0 }
 0x12d   :  { %v1879_v25 = vpop.f32.mrb[1].mxu1  ;;  %v1858_v26 = vadd.f32 %v1857_v24, %v1856_v21  ;;  %v1859_v28 = vpop.f32.mrb[2].mxu0 }
 0x12e   :  { %v1880_v27 = vadd.f32 %v1879_v25, %v1878_v22  ;;  %v1881_v29 = vpop.f32.mrb[2].mxu1  ;;  %v1860_v30 = vpop.f32.mrb[3].mxu0 }
 0x12f   :  { %v1882_v31 = vpop.f32.mrb[3].mxu1  ;;  %v647_v32 = vadd.f32 %v1858_v26, %v1758_v23 }
 0x131   :  { %v687_v33 = vadd.f32 %v1880_v27, %v647_v32 }
 0x14b   :  { %v1900_v34 = vpop.f32.mrb[4].mxu0 }
 0x14c   :  { %v1922_v35 = vpop.f32.mrb[4].mxu1  ;;  %v1901_v36 = vpop.f32.mrb[5].mxu0 }
 0x14d   :  { %v1923_v37 = vpop.f32.mrb[5].mxu1  ;;  %v1902_v38 = vadd.f32 %v1901_v36, %v1900_v34  ;;  %v1903_v40 = vpop.f32.mrb[6].mxu0 }
 0x14e   :  { %v1924_v39 = vadd.f32 %v1923_v37, %v1922_v35  ;;  %v1925_v41 = vpop.f32.mrb[6].mxu1  ;;  %v1904_v42 = vpop.f32.mrb[7].mxu0 }
 0x14f   :  { %v1926_v43 = vpop.f32.mrb[7].mxu1  ;;  %v727_v44 = vadd.f32 %v1902_v38, %v687_v33 }
 0x151   :  { %v767_v45 = vadd.f32 %v1924_v39, %v727_v44 }
 0x153   :  { %v772_v46 = vmax.f32 %v767_v45, 0.0 }
 0x155   :  { %v773_v47 = vpack.c.bf16 %v772_v46, %v772_v46 }
 0x157   :  { %1954 = vmatmul.mubr.bf16.vlgmr.msra.gmra.mrb[8].mxu0 %v773_v47 }
 0x22a   :  { %v879_v49 = vpop.f32.mrb[8].mxu0 }
 0x22b   :  { %v2321_v50 = vadd.f32 %v1831_v48, %v879_v49  ;;  %v1955_v51 = vpop.f32.mrb[9].mxu0 }
 0x22c   :  { %v882_v52 = vpop.f32.mrb[10].mxu0 }
 0x22d   :  { %892 = vrot.lane.b32.xlu1 %v2321_v50, %s2226_s7  ;;  %886 = vrot.lane.b32.xlu0 %v2321_v50, %s2227_s8  ;;  %v1956_v53 = vpop.f32.mrb[11].mxu0 }
 0x231   :  { %895 = vrot.lane.b32.xlu1 %v2321_v50, %s2228_s9  ;;  %889 = vrot.lane.b32.xlu0 %v2321_v50, %s2229_s10 }
 0x235   :  { %901 = vrot.lane.b32.xlu1 %v2321_v50, %s2230_s4  ;;  %898 = vrot.lane.b32.xlu0 %v2321_v50, %s2231_s11 }
 0x239   :  { %907 = vrot.lane.b32.xlu1 %v2321_v50, %s2220_s28  ;;  %904 = vrot.lane.b32.xlu0 %v2321_v50, %s2232_s12 }
 0x23d   :  { %913 = vrot.lane.b32.xlu1 %v2321_v50, %s2233_s13  ;;  %910 = vrot.lane.b32.xlu0 %v2321_v50, %s2234_s14 }
 0x241   :  { %919 = vrot.lane.b32.xlu1 %v2321_v50, %s2235_s15  ;;  %916 = vrot.lane.b32.xlu0 %v2321_v50, %s2236_s16 }
 0x245   :  { %925 = vrot.lane.b32.xlu1 %v2321_v50, %s2237_s17  ;;  %922 = vrot.lane.b32.xlu0 %v2321_v50, %s2238_s1 }
 0x249   :  { %928 = vrot.lane.b32.xlu0 %v2321_v50, %s2239_s18 }
 0x29f   :  { %v893_v54 = vpop.permute.xlu1 %892  ;;  %v887_v55 = vpop.permute.xlu0 %886 }
 0x2a0   :  { %v947_v5 = vcombine.low %v887_v55, %v893_v54  ;;  %v948_v16 = vcombine.high %v887_v55, %v893_v54 }
 0x2a2   :  { %v955_v13 = vrot.slane %v947_v5, %v2354_v4  ;;  %v962_v29 = vrot.slane %v948_v16, %v2354_v4 }
 0x2a3   :  { %v896_v59 = vpop.permute.xlu1 %895  ;;  %v890_v60 = vpop.permute.xlu0 %889 }
 0x2a4   :  { %v931_v1 = vcombine.low %v2321_v50, %v890_v60  ;;  %v932_v9 = vcombine.high %v2321_v50, %v890_v60 }
 0x2a6   :  { %v939_v7 = vrot.slane %v931_v1, %v2354_v4  ;;  %v946_v22 = vrot.slane %v932_v9, %v2354_v4 }
 0x2a7   :  { %v902_v2 = vpop.permute.xlu1 %901  ;;  %v899_v3 = vpop.permute.xlu0 %898 }
 0x2a8   :  { %v963_v8 = vcombine.low %v896_v59, %v902_v2  ;;  %v964_v10 = vcombine.high %v896_v59, %v902_v2  ;;  %v995_v18 = vcombine.low %v939_v7, %v955_v13  ;;  %v996_v26 = vcombine.high %v939_v7, %v955_v13 }
 0x2a9   :  { %v1011_v34 = vcombine.low %v946_v22, %v962_v29  ;;  %v1012_v47 = vcombine.high %v946_v22, %v962_v29 }
 0x2aa   :  { %v971_v19 = vrot.slane %v963_v8, %v2354_v4  ;;  %v978_v23 = vrot.slane %v964_v10, %v2354_v4  ;;  %v1003_v31 = vrot.slane %v995_v18, %v2361_v17  ;;  %v1010_v39 = vrot.slane %v996_v26, %v2361_v17 }
 0x2ab   :  { %v2358_v11 = vpop.permute.xlu1 %907  ;;  %v905_v12 = vpop.permute.xlu0 %904  ;;  %v1019_v51 = vrot.slane %v1011_v34, %v2361_v17  ;;  %v1026_v62 = vrot.slane %v1012_v47, %v2361_v17 }
 0x2ac   :  { %v979_v14 = vcombine.low %v899_v3, %v905_v12  ;;  %v980_v15 = vcombine.high %v899_v3, %v905_v12 }
 0x2ae   :  { %v987_v20 = vrot.slane %v979_v14, %v2354_v4  ;;  %v994_v21 = vrot.slane %v980_v15, %v2354_v4 }
 0x2af   :  { %v2368_v24 = vpop.permute.xlu1 %913  ;;  %v911_v25 = vpop.permute.xlu0 %910 }
 0x2b0   :  { %v1027_v27 = vcombine.low %v971_v19, %v987_v20  ;;  %v1028_v28 = vcombine.high %v971_v19, %v987_v20  ;;  %v1043_v30 = vcombine.low %v978_v23, %v994_v21  ;;  %v1044_v40 = vcombine.high %v978_v23, %v994_v21 }
 0x2b1   :  { %v1067_v48 = vcombine.low %v2358_v11, %v2368_v24  ;;  %v1068_v63 = vcombine.high %v2358_v11, %v2368_v24 }
 0x2b2   :  { %v1035_v32 = vrot.slane %v1027_v27, %v2361_v17  ;;  %v1042_v33 = vrot.slane %v1028_v28, %v2361_v17  ;;  %v1051_v42 = vrot.slane %v1043_v30, %v2361_v17  ;;  %v1058_v55 = vrot.slane %v1044_v40, %v2361_v17 }
 0x2b3   :  { %v920_v35 = vpop.permute.xlu1 %919  ;;  %v917_v36 = vpop.permute.xlu0 %916  ;;  %v1075_v59 = vrot.slane %v1067_v48, %v2354_v4  ;;  %v1082_v18 = vrot.slane %v1068_v63, %v2354_v4 }
 0x2b4   :  { %v2374_v37 = vcombine.high %v1003_v31, %v1035_v32  ;;  %v2376_v38 = vcombine.low %v1003_v31, %v1035_v32  ;;  %v1083_v41 = vcombine.low %v911_v25, %v917_v36  ;;  %v2384_v45 = vcombine.low %v1010_v39, %v1042_v33 }
 0x2b5   :  { %v2386_v46 = vcombine.high %v1010_v39, %v1042_v33  ;;  %v2392_v53 = vcombine.low %v1019_v51, %v1051_v42  ;;  %v2394_v54 = vcombine.high %v1019_v51, %v1051_v42  ;;  %v1084_v0 = vcombine.high %v911_v25, %v917_v36 }
 0x2b6   :  { %v1210_v43 = vsel %vm1203_vm1, %v2374_v37, -inf  ;;  %v1204_v44 = vsel %vm1203_vm1, %v2376_v38, -inf  ;;  %v1091_v52 = vrot.slane %v1083_v41, %v2354_v4  ;;  %v1216_v57 = vsel %vm1203_vm1, %v2384_v45, -inf }
 0x2b7   :  { %v926_v49 = vpop.permute.xlu1 %925  ;;  %1211 = vmax.xlane.f32.xlu0 %v1210_v43  ;;  %1205 = vmax.xlane.f32.xlu1 %v1204_v44  ;;  %v923_v50 = vpop.permute.xlu0 %922  ;;  %v1222_v58 = vsel %vm1203_vm1, %v2386_v46, -inf  ;;  %v1228_v5 = vsel %vm1203_vm1, %v2392_v53, -inf  ;;  %v1234_v6 = vsel %vm1203_vm1, %v2394_v54, -inf  ;;  %v2409_v7 = vcombine.low %v1026_v62, %v1058_v55 }
 0x2b8   :  { %v1099_v56 = vcombine.low %v920_v35, %v926_v49  ;;  %v1100_v60 = vcombine.high %v920_v35, %v926_v49  ;;  %v1131_v3 = vcombine.low %v1075_v59, %v1091_v52  ;;  %v2414_v12 = vcombine.high %v1026_v62, %v1058_v55 }
 0x2b9   :  { %v1098_v13 = vrot.slane %v1084_v0, %v2354_v4  ;;  %v1132_v14 = vcombine.high %v1075_v59, %v1091_v52  ;;  %v1240_v21 = vsel %vm1203_vm1, %v2409_v7, -inf }
 0x2ba   :  { %v1107_v8 = vrot.slane %v1099_v56, %v2354_v4  ;;  %v1114_v11 = vrot.slane %v1100_v60, %v2354_v4  ;;  %v1139_v20 = vrot.slane %v1131_v3, %v2361_v17  ;;  %v1246_v22 = vsel %vm1203_vm1, %v2414_v12, -inf }
 0x2bb   :  { %1217 = vmax.xlane.f32.xlu0 %v1216_v57  ;;  %1223 = vmax.xlane.f32.xlu1 %v1222_v58  ;;  %v929_v61 = vpop.permute.xlu0 %928  ;;  %v1147_v25 = vcombine.low %v1082_v18, %v1098_v13  ;;  %v1146_v28 = vrot.slane %v1132_v14, %v2361_v17  ;;  %v1148_v35 = vcombine.high %v1082_v18, %v1098_v13 }
 0x2bc   :  { %v1115_v1 = vcombine.low %v923_v50, %v929_v61  ;;  %v1116_v2 = vcombine.high %v923_v50, %v929_v61 }
 0x2bd   :  { %v1155_v36 = vrot.slane %v1147_v25, %v2361_v17  ;;  %v1162_v44 = vrot.slane %v1148_v35, %v2361_v17 }
 0x2be   :  { %v1123_v9 = vrot.slane %v1115_v1, %v2354_v4  ;;  %v1130_v10 = vrot.slane %v1116_v2, %v2354_v4 }
 0x2bf   :  { %1229 = vmax.xlane.f32.xlu0 %v1228_v5  ;;  %1235 = vmax.xlane.f32.xlu1 %v1234_v6 }
 0x2c0   :  { %v1163_v15 = vcombine.low %v1107_v8, %v1123_v9  ;;  %v1164_v16 = vcombine.high %v1107_v8, %v1123_v9  ;;  %v1179_v19 = vcombine.low %v1114_v11, %v1130_v10  ;;  %v1180_v29 = vcombine.high %v1114_v11, %v1130_v10 }
 0x2c2   :  { %v1171_v23 = vrot.slane %v1163_v15, %v2361_v17  ;;  %v1178_v24 = vrot.slane %v1164_v16, %v2361_v17  ;;  %v1187_v30 = vrot.slane %v1179_v19, %v2361_v17  ;;  %v1194_v39 = vrot.slane %v1180_v29, %v2361_v17 }
 0x2c3   :  { %1241 = vmax.xlane.f32.xlu0 %v1240_v21  ;;  %1247 = vmax.xlane.f32.xlu1 %v1246_v22 }
 0x2c4   :  { %v2426_v26 = vcombine.high %v1139_v20, %v1171_v23  ;;  %v2428_v27 = vcombine.low %v1139_v20, %v1171_v23  ;;  %v2436_v33 = vcombine.high %v1146_v28, %v1178_v24  ;;  %v2438_v34 = vcombine.low %v1146_v28, %v1178_v24 }
 0x2c5   :  { %v2446_v42 = vcombine.high %v1155_v36, %v1187_v30  ;;  %v2448_v43 = vcombine.low %v1155_v36, %v1187_v30  ;;  %v2455_v49 = vcombine.high %v1162_v44, %v1194_v39  ;;  %v2457_v50 = vcombine.low %v1162_v44, %v1194_v39 }
 0x2c6   :  { %v1213_v31 = vsel %vm1203_vm1, %v2426_v26, -inf  ;;  %v1207_v32 = vsel %vm1203_vm1, %v2428_v27, -inf  ;;  %v1225_v40 = vsel %vm1203_vm1, %v2436_v33, -inf  ;;  %v1219_v41 = vsel %vm1203_vm1, %v2438_v34, -inf }
 0x2c7   :  { %1214 = vmax.xlane.f32.xlu1 %v1213_v31  ;;  %1208 = vmax.xlane.f32.xlu0 %v1207_v32  ;;  %v1237_v47 = vsel %vm1203_vm1, %v2446_v42, -inf  ;;  %v1231_v48 = vsel %vm1203_vm1, %v2448_v43, -inf  ;;  %v1249_v51 = vsel %vm1203_vm1, %v2455_v49, -inf  ;;  %v1243_v52 = vsel %vm1203_vm1, %v2457_v50, -inf }
 0x2cb   :  { %1226 = vmax.xlane.f32.xlu1 %v1225_v40  ;;  %1220 = vmax.xlane.f32.xlu0 %v1219_v41 }
 0x2cf   :  { %1238 = vmax.xlane.f32.xlu1 %v1237_v47  ;;  %1232 = vmax.xlane.f32.xlu0 %v1231_v48 }
 0x2d3   :  { %1250 = vmax.xlane.f32.xlu1 %v1249_v51  ;;  %1244 = vmax.xlane.f32.xlu0 %v1243_v52 }
 0x344   :  { %v1206_v55 = vpop.xlane.xlu1 %1205  ;;  %v1212_v56 = vpop.xlane.xlu0 %1211 }
 0x345   :  { %v1252_v57 = vsub.f32 %v2376_v38, %v1206_v55  ;;  %v1254_v58 = vsub.f32 %v2374_v37, %v1212_v56 }
 0x347   :  { %v1268_v59 = vmul.f32 1.442695, %v1252_v57  ;;  %v1272_v60 = vmul.f32 1.442695, %v1254_v58 }
 0x348   :  { %v1224_v61 = vpop.xlane.xlu1 %1223  ;;  %v1218_v62 = vpop.xlane.xlu0 %1217 }
 0x349   :  { %2061 = vpow2.f32 %v1268_v59  ;;  %v1258_v63 = vsub.f32 %v2386_v46, %v1224_v61  ;;  %v1256_v0 = vsub.f32 %v2384_v45, %v1218_v62 }
 0x34a   :  { %2063 = vpow2.f32 %v1272_v60 }
 0x34b   :  { %v1280_v1 = vmul.f32 1.442695, %v1258_v63  ;;  %v1276_v2 = vmul.f32 1.442695, %v1256_v0 }
 0x34c   :  { %v1236_v3 = vpop.xlane.xlu1 %1235  ;;  %v1230_v5 = vpop.xlane.xlu0 %1229 }
 0x34d   :  { %2065 = vpow2.f32 %v1280_v1  ;;  %v1262_v6 = vsub.f32 %v2394_v54, %v1236_v3  ;;  %v1260_v38 = vsub.f32 %v2392_v53, %v1230_v5 }
 0x34e   :  { %2067 = vpow2.f32 %v1276_v2 }
 0x34f   :  { %v1288_v37 = vmul.f32 1.442695, %v1262_v6  ;;  %v1284_v8 = vmul.f32 1.442695, %v1260_v38 }
 0x350   :  { %v1248_v9 = vpop.xlane.xlu1 %1247  ;;  %v1242_v10 = vpop.xlane.xlu0 %1241 }
 0x351   :  { %2069 = vpow2.f32 %v1288_v37  ;;  %v1266_v46 = vsub.f32 %v2414_v12, %v1248_v9  ;;  %v1264_v45 = vsub.f32 %v2409_v7, %v1242_v10 }
 0x352   :  { %2071 = vpow2.f32 %v1284_v8 }
 0x353   :  { %v2471_v11 = vpop.eup %2061  ;;  %v1296_v13 = vmul.f32 1.442695, %v1266_v46  ;;  %v1292_v14 = vmul.f32 1.442695, %v1264_v45 }
 0x354   :  { %v2473_v15 = vpop.eup %2063  ;;  %v1215_v54 = vpop.xlane.xlu1 %1214  ;;  %v1300_v53 = vsel %vm1203_vm1, %v2471_v11, 0.0 }
 0x355   :  { %v1209_v16 = vpop.xlane.xlu0 %1208  ;;  %2073 = vpow2.f32 %v1296_v13  ;;  %v1255_v18 = vsub.f32 %v2426_v26, %v1215_v54  ;;  %1301 = vadd.xlane.f32.xlu0 %v1300_v53  ;;  %v1306_v7 = vsel %vm1203_vm1, %v2473_v15, 0.0 }
 0x356   :  { %v1253_v19 = vsub.f32 %v2428_v27, %v1209_v16  ;;  %2075 = vpow2.f32 %v1292_v14  ;;  %1307 = vadd.xlane.f32.xlu1 %v1306_v7 }
 0x357   :  { %v2481_v12 = vpop.eup %2065  ;;  %v1274_v20 = vmul.f32 1.442695, %v1255_v18 }
 0x358   :  { %v1270_v21 = vmul.f32 1.442695, %v1253_v19  ;;  %v2483_v22 = vpop.eup %2067  ;;  %v1227_v23 = vpop.xlane.xlu1 %1226  ;;  %v1318_v25 = vsel %vm1203_vm1, %v2481_v12, 0.0 }
 0x359   :  { %v1221_v24 = vpop.xlane.xlu0 %1220  ;;  %2077 = vpow2.f32 %v1274_v20  ;;  %v1259_v26 = vsub.f32 %v2436_v33, %v1227_v23  ;;  %v1312_v28 = vsel %vm1203_vm1, %v2483_v22, 0.0 }
 0x35a   :  { %v1257_v27 = vsub.f32 %v2438_v34, %v1221_v24  ;;  %2079 = vpow2.f32 %v1270_v21  ;;  %1319 = vadd.xlane.f32.xlu1 %v1318_v25  ;;  %1313 = vadd.xlane.f32.xlu0 %v1312_v28 }
 0x35b   :  { %v2491_v29 = vpop.eup %2069  ;;  %v1282_v30 = vmul.f32 1.442695, %v1259_v26 }
 0x35c   :  { %v1278_v31 = vmul.f32 1.442695, %v1257_v27  ;;  %v2493_v32 = vpop.eup %2071  ;;  %v1239_v35 = vpop.xlane.xlu1 %1238  ;;  %v1330_v39 = vsel %vm1203_vm1, %v2491_v29, 0.0 }
 0x35d   :  { %v1233_v36 = vpop.xlane.xlu0 %1232  ;;  %2081 = vpow2.f32 %v1282_v30  ;;  %v1263_v33 = vsub.f32 %v2446_v42, %v1239_v35  ;;  %v1324_v40 = vsel %vm1203_vm1, %v2493_v32, 0.0 }
 0x35e   :  { %v1261_v34 = vsub.f32 %v2448_v43, %v1233_v36  ;;  %2083 = vpow2.f32 %v1278_v31  ;;  %1331 = vadd.xlane.f32.xlu1 %v1330_v39  ;;  %1325 = vadd.xlane.f32.xlu0 %v1324_v40 }
 0x35f   :  { %v2501_v41 = vpop.eup %2073  ;;  %v1290_v44 = vmul.f32 1.442695, %v1263_v33 }
 0x360   :  { %v1286_v47 = vmul.f32 1.442695, %v1261_v34  ;;  %v2503_v48 = vpop.eup %2075  ;;  %v1251_v51 = vpop.xlane.xlu1 %1250  ;;  %v1342_v55 = vsel %vm1203_vm1, %v2501_v41, 0.0 }
 0x361   :  { %v1245_v52 = vpop.xlane.xlu0 %1244  ;;  %2085 = vpow2.f32 %v1290_v44  ;;  %v1267_v42 = vsub.f32 %v2455_v49, %v1251_v51  ;;  %v1336_v56 = vsel %vm1203_vm1, %v2503_v48, 0.0 }
 0x362   :  { %v1265_v43 = vsub.f32 %v2457_v50, %v1245_v52  ;;  %2087 = vpow2.f32 %v1286_v47  ;;  %1343 = vadd.xlane.f32.xlu1 %v1342_v55  ;;  %1337 = vadd.xlane.f32.xlu0 %v1336_v56 }
 0x363   :  { %v2511_v57 = vpop.eup %2077  ;;  %v1298_v58 = vmul.f32 1.442695, %v1267_v42 }
 0x364   :  { %v1294_v59 = vmul.f32 1.442695, %v1265_v43  ;;  %v2513_v60 = vpop.eup %2079  ;;  %v1309_v61 = vsel %vm1203_vm1, %v2511_v57, 0.0 }
 0x365   :  { %2089 = vpow2.f32 %v1298_v58  ;;  %v1303_v49 = vsel %vm1203_vm1, %v2513_v60, 0.0 }
 0x366   :  { %2091 = vpow2.f32 %v1294_v59  ;;  %1310 = vadd.xlane.f32.xlu1 %v1309_v61  ;;  %1304 = vadd.xlane.f32.xlu0 %v1303_v49 }
 0x367   :  { %v2519_v50 = vpop.eup %2081 }
 0x368   :  { %v2521_v62 = vpop.eup %2083  ;;  %v1321_v63 = vsel %vm1203_vm1, %v2519_v50, 0.0 }
 0x369   :  { %v1315_v0 = vsel %vm1203_vm1, %v2521_v62, 0.0 }
 0x36a   :  { %1322 = vadd.xlane.f32.xlu1 %v1321_v63  ;;  %1316 = vadd.xlane.f32.xlu0 %v1315_v0 }
 0x36b   :  { %v2527_v1 = vpop.eup %2085 }
 0x36c   :  { %v2529_v2 = vpop.eup %2087  ;;  %v1333_v3 = vsel %vm1203_vm1, %v2527_v1, 0.0 }
 0x36d   :  { %v1327_v5 = vsel %vm1203_vm1, %v2529_v2, 0.0 }
 0x36e   :  { %1334 = vadd.xlane.f32.xlu1 %v1333_v3  ;;  %1328 = vadd.xlane.f32.xlu0 %v1327_v5 }
 0x36f   :  { %v2535_v6 = vpop.eup %2089 }
 0x370   :  { %v2537_v38 = vpop.eup %2091  ;;  %v1345_v37 = vsel %vm1203_vm1, %v2535_v6, 0.0 }
 0x371   :  { %v1339_v8 = vsel %vm1203_vm1, %v2537_v38, 0.0 }
 0x372   :  { %1346 = vadd.xlane.f32.xlu1 %v1345_v37  ;;  %1340 = vadd.xlane.f32.xlu0 %v1339_v8 }
 0x3e2   :  { %v1302_v9 = vpop.xlane.xlu0 %1301 }
 0x3e3   :  { %v1308_v10 = vpop.xlane.xlu1 %1307  ;;  %2093 = vrcp.f32 %v1302_v9 }
 0x3e4   :  { %2095 = vrcp.f32 %v1308_v10 }
 0x3e7   :  { %v1320_v46 = vpop.xlane.xlu1 %1319  ;;  %v1314_v45 = vpop.xlane.xlu0 %1313 }
 0x3e8   :  { %2097 = vrcp.f32 %v1320_v46 }
 0x3e9   :  { %2099 = vrcp.f32 %v1314_v45 }
 0x3eb   :  { %v1332_v13 = vpop.xlane.xlu1 %1331  ;;  %v1326_v14 = vpop.xlane.xlu0 %1325 }
 0x3ec   :  { %2101 = vrcp.f32 %v1332_v13 }
 0x3ed   :  { %2103 = vrcp.f32 %v1326_v14  ;;  %v2094_v53 = vpop.eup %2093 }
 0x3ee   :  { %v2096_v18 = vpop.eup %2095  ;;  %v1364_v26 = vmul.f32 %v2094_v53, %v2471_v11 }
 0x3ef   :  { %v1344_v54 = vpop.xlane.xlu1 %1343  ;;  %v1338_v16 = vpop.xlane.xlu0 %1337  ;;  %v1366_v25 = vmul.f32 %v2096_v18, %v2473_v15 }
 0x3f0   :  { %2105 = vrcp.f32 %v1344_v54 }
 0x3f1   :  { %2107 = vrcp.f32 %v1338_v16 }
 0x3f2   :  { %v2098_v19 = vpop.eup %2097 }
 0x3f3   :  { %v2100_v7 = vpop.eup %2099  ;;  %v1370_v20 = vmul.f32 %v2098_v19, %v2481_v12  ;;  %v1311_v21 = vpop.xlane.xlu1 %1310 }
 0x3f4   :  { %v1305_v23 = vpop.xlane.xlu0 %1304  ;;  %v1368_v24 = vmul.f32 %v2100_v7, %v2483_v22  ;;  %2109 = vrcp.f32 %v1311_v21 }
 0x3f5   :  { %2111 = vrcp.f32 %v1305_v23  ;;  %v1396_v31 = vcombine.low %v1366_v25, %v1370_v20  ;;  %v1397_v39 = vcombine.high %v1366_v25, %v1370_v20 }
 0x3f6   :  { %v1380_v30 = vcombine.low %v1364_v26, %v1368_v24  ;;  %v2102_v35 = vpop.eup %2101  ;;  %v1381_v33 = vcombine.high %v1364_v26, %v1368_v24 }
 0x3f7   :  { %v1323_v27 = vpop.xlane.xlu1 %1322  ;;  %v2104_v36 = vpop.eup %2103  ;;  %v1374_v22 = vmul.f32 %v2102_v35, %v2491_v29  ;;  %v1404_v47 = vrot.slane %v1396_v31, %v2354_v4  ;;  %v1411_v42 = vrot.slane %v1397_v39, %v2354_v4 }
 0x3f8   :  { %v1317_v28 = vpop.xlane.xlu0 %1316  ;;  %2113 = vrcp.f32 %v1323_v27  ;;  %v1388_v44 = vrot.slane %v1380_v30, %v2354_v4  ;;  %v1372_v51 = vmul.f32 %v2104_v36, %v2493_v32  ;;  %v1395_v29 = vrot.slane %v1381_v33, %v2354_v4 }
 0x3f9   :  { %2115 = vrcp.f32 %v1317_v28 }
 0x3fa   :  { %v2106_v12 = vpop.eup %2105  ;;  %v1445_v49 = vcombine.high %v1388_v44, %v1404_v47  ;;  %v1444_v63 = vcombine.low %v1388_v44, %v1404_v47  ;;  %v1460_v14 = vcombine.low %v1395_v29, %v1411_v42 }
 0x3fb   :  { %v2108_v34 = vpop.eup %2107  ;;  %v1378_v15 = vmul.f32 %v2106_v12, %v2501_v41  ;;  %v1335_v40 = vpop.xlane.xlu1 %1334 }
 0x3fc   :  { %v1329_v11 = vpop.xlane.xlu0 %1328  ;;  %v1376_v52 = vmul.f32 %v2108_v34, %v2503_v48  ;;  %2117 = vrcp.f32 %v1335_v40  ;;  %v1459_v45 = vrot.slane %v1445_v49, %v2361_v17  ;;  %v2561_v13 = vrot.slane %v1444_v63, %v2361_v17 }
 0x3fd   :  { %v1428_v55 = vcombine.low %v1374_v22, %v1378_v15  ;;  %v1429_v43 = vcombine.high %v1374_v22, %v1378_v15  ;;  %2119 = vrcp.f32 %v1329_v11 }
 0x3fe   :  { %v1412_v56 = vcombine.low %v1372_v51, %v1376_v52  ;;  %v1413_v41 = vcombine.high %v1372_v51, %v1376_v52  ;;  %v2110_v0 = vpop.eup %2109 }
 0x3ff   :  { %v1347_v58 = vpop.xlane.xlu1 %1346  ;;  %v1436_v61 = vrot.slane %v1428_v55, %v2354_v4  ;;  %v1443_v32 = vrot.slane %v1429_v43, %v2354_v4  ;;  %v2112_v5 = vpop.eup %2111  ;;  %v1367_v19 = vmul.f32 %v2110_v0, %v2511_v57 }
 0x400   :  { %v1341_v59 = vpop.xlane.xlu0 %1340  ;;  %2121 = vrcp.f32 %v1347_v58  ;;  %v1420_v48 = vrot.slane %v1412_v56, %v2354_v4  ;;  %v1427_v3 = vrot.slane %v1413_v41, %v2354_v4  ;;  %v1365_v7 = vmul.f32 %v2112_v5, %v2513_v60 }
 0x401   :  { %2123 = vrcp.f32 %v1341_v59 }
 0x402   :  { %v2114_v37 = vpop.eup %2113  ;;  %v1477_v8 = vcombine.high %v1420_v48, %v1436_v61  ;;  %v1476_v9 = vcombine.low %v1420_v48, %v1436_v61  ;;  %v1492_v10 = vcombine.low %v1427_v3, %v1443_v32  ;;  %v1493_v24 = vcombine.high %v1427_v3, %v1443_v32 }
 0x403   :  { %v2116_v46 = vpop.eup %2115  ;;  %v1371_v54 = vmul.f32 %v2114_v37, %v2519_v50  ;;  %v1461_v50 = vcombine.high %v1395_v29, %v1411_v42 }
 0x404   :  { %v1369_v16 = vmul.f32 %v2116_v46, %v2521_v62  ;;  %v1491_v53 = vrot.slane %v1477_v8, %v2361_v17  ;;  %v2567_v18 = vrot.slane %v1476_v9, %v2361_v17  ;;  %v1500_v23 = vrot.slane %v1492_v10, %v2361_v17 }
 0x405   :  { %v1468_v62 = vrot.slane %v1460_v14, %v2361_v17  ;;  %v1532_v57 = vcombine.low %v1367_v19, %v1371_v54  ;;  %v1507_v35 = vrot.slane %v1493_v24, %v2361_v17  ;;  %v1475_v34 = vrot.slane %v1461_v50, %v2361_v17 }
 0x406   :  { %v1510_v20 = vcombine.low %v1459_v45, %v1491_v53  ;;  %v1509_v21 = vcombine.high %v2561_v13, %v2567_v18  ;;  %v2118_v25 = vpop.eup %2117  ;;  %v1516_v27 = vcombine.low %v1365_v7, %v1369_v16  ;;  %v1508_v60 = vcombine.low %v2561_v13, %v2567_v18 }
 0x407   :  { %v2120_v26 = vpop.eup %2119  ;;  %v1511_v30 = vcombine.high %v1459_v45, %v1491_v53  ;;  %v1512_v31 = vcombine.low %v1468_v62, %v1500_v23  ;;  %v1375_v39 = vmul.f32 %v2118_v25, %v2527_v1  ;;  %v1540_v40 = vrot.slane %v1532_v57, %v2354_v4 }
 0x408   :  { %1657 = vrot.lane.b32.xlu1 %v1510_v20, %s2237_s17  ;;  %1653 = vrot.lane.b32.xlu0 %v1509_v21, %s2239_s18  ;;  %v1373_v12 = vmul.f32 %v2120_v26, %v2529_v2  ;;  %v1524_v15 = vrot.slane %v1516_v27, %v2354_v4  ;;  %v1513_v11 = vcombine.high %v1468_v62, %v1500_v23 }
 0x409   :  { %v1514_v47 = vcombine.low %v1475_v34, %v1507_v35  ;;  %v1533_v52 = vcombine.high %v1367_v19, %v1371_v54  ;;  %v1517_v42 = vcombine.high %v1365_v7, %v1369_v16  ;;  %v1515_v43 = vcombine.high %v1475_v34, %v1507_v35 }
 0x40a   :  { %v2122_v28 = vpop.eup %2121  ;;  %v1580_v55 = vcombine.low %v1524_v15, %v1540_v40  ;;  %v1581_v63 = vcombine.high %v1524_v15, %v1540_v40 }
 0x40b   :  { %v2124_v36 = vpop.eup %2123  ;;  %v1379_v33 = vmul.f32 %v2122_v28, %v2535_v6  ;;  %v1547_v59 = vrot.slane %v1533_v52, %v2354_v4  ;;  %v1531_v32 = vrot.slane %v1517_v42, %v2354_v4 }
 0x40c   :  { %v1377_v22 = vmul.f32 %v2124_v36, %v2537_v38  ;;  %1661 = vrot.lane.b32.xlu1 %v1511_v30, %s2238_s1  ;;  %1665 = vrot.lane.b32.xlu0 %v1512_v31, %s2235_s15  ;;  %v1588_v61 = vrot.slane %v1580_v55, %v2361_v17  ;;  %v1595_v37 = vrot.slane %v1581_v63, %v2361_v17 }
 0x40d   :  { %v1564_v44 = vcombine.low %v1375_v39, %v1379_v33  ;;  %v1565_v2 = vcombine.high %v1375_v39, %v1379_v33  ;;  %v1596_v8 = vcombine.low %v1531_v32, %v1547_v59  ;;  %v1597_v14 = vcombine.high %v1531_v32, %v1547_v59 }
 0x40e   :  { %v1548_v1 = vcombine.low %v1373_v12, %v1377_v22  ;;  %v1549_v51 = vcombine.high %v1373_v12, %v1377_v22 }
 0x40f   :  { %v1572_v6 = vrot.slane %v1564_v44, %v2354_v4  ;;  %v1579_v58 = vrot.slane %v1565_v2, %v2354_v4  ;;  %v1611_v19 = vrot.slane %v1597_v14, %v2361_v17 }
 0x410   :  { %1669 = vrot.lane.b32.xlu1 %v1513_v11, %s2236_s16  ;;  %1673 = vrot.lane.b32.xlu0 %v1514_v47, %s2233_s13  ;;  %v1556_v38 = vrot.slane %v1548_v1, %v2354_v4  ;;  %v1563_v41 = vrot.slane %v1549_v51, %v2354_v4  ;;  %v1604_v4 = vrot.slane %v1596_v8, %v2361_v17 }
 0x412   :  { %v1612_v56 = vcombine.low %v1556_v38, %v1572_v6  ;;  %v1613_v29 = vcombine.high %v1556_v38, %v1572_v6  ;;  %v1628_v5 = vcombine.low %v1563_v41, %v1579_v58  ;;  %v1629_v45 = vcombine.high %v1563_v41, %v1579_v58 }
 0x414   :  { %1677 = vrot.lane.b32.xlu1 %v1515_v43, %s2234_s14  ;;  %v1620_v49 = vrot.slane %v1612_v56, %v2361_v17  ;;  %v1627_v3 = vrot.slane %v1613_v29, %v2361_v17  ;;  %v1636_v46 = vrot.slane %v1628_v5, %v2361_v17  ;;  %v1643_v53 = vrot.slane %v1629_v45, %v2361_v17 }
 0x416   :  { %v1645_v0 = vcombine.high %v1588_v61, %v1620_v49  ;;  %v1644_v48 = vcombine.low %v1588_v61, %v1620_v49  ;;  %v1647_v9 = vcombine.high %v1595_v37, %v1627_v3  ;;  %v1646_v10 = vcombine.low %v1595_v37, %v1627_v3 }
 0x417   :  { %v1649_v54 = vcombine.high %v1604_v4, %v1636_v46  ;;  %v1648_v16 = vcombine.low %v1604_v4, %v1636_v46  ;;  %v1651_v7 = vcombine.high %v1611_v19, %v1643_v53  ;;  %v1650_v20 = vcombine.low %v1611_v19, %v1643_v53 }
 0x418   :  { %1685 = vrot.lane.b32.xlu1 %v1645_v0, %s2232_s12  ;;  %1681 = vrot.lane.b32.xlu0 %v1644_v48, %s2220_s28  ;;  %s2242_s28 = smov [#allocation8]  }
 0x419   :  { %s1748_s19 = sshll.u32 %s2242_s28, 4  ;;  %s1749_s19 = int_to_ptr.vmem [resolvable:$true] %s1748_s19 }
 0x41a   :  { %s2191_s20 = scalar_lea.vmem %s1749_s19, 128  ;;  %p2196_p11 = scmp.lt.s32.totalorder %s1749_s19, %s1749_s19 }
 0x41b   :  { %p2192_p10 = scmp.ne.s32.totalorder %s1749_s19, %s2191_s20  ;;  %p2197_p12 = scmp.lt.s32.totalorder %s2191_s20, %s2191_s20 }
 0x41c   :  { %1693 = vrot.lane.b32.xlu1 %v1647_v9, %s2231_s11  ;;  %1689 = vrot.lane.b32.xlu0 %v1646_v10, %s2230_s4 }
 0x41d   :  { %p2198_p13 = por %p2197_p12, %p2196_p11 }
 0x41f   :  { %p2199_p0 = pnand %p2198_p13, %p2192_p10 }
 0x420   :  { %1701 = vrot.lane.b32.xlu1 %v1649_v54, %s2226_s7  ;;  %1697 = vrot.lane.b32.xlu0 %v1648_v16, %s2228_s9 }
 0x424   :  { %1709 = vrot.lane.b32.xlu1 %v1651_v7, %s2227_s8  ;;  %1705 = vrot.lane.b32.xlu0 %v1650_v20, %s2229_s10 }
 0x47a   :  { %v1658_v21 = vpop.permute.xlu1 %1657  ;;  %v1654_v23 = vpop.permute.xlu0 %1653 }
 0x47b   :  { %v1712_v24 = vsel %vm1203_vm1, %v1508_v60, %v1654_v23 }
 0x47c   :  { %v1714_v26 = vsel %vm1713_vm2, %v1712_v24, %v1658_v21 }
 0x47e   :  { %v1662_v25 = vpop.permute.xlu1 %1661  ;;  %v1666_v50 = vpop.permute.xlu0 %1665 }
 0x47f   :  { %v1716_v62 = vsel %vm1715_vm3, %v1714_v26, %v1662_v25 }
 0x480   :  { %v1718_v27 = vsel %vm1717_vm4, %v1716_v62, %v1666_v50 }
 0x482   :  { %v1670_v17 = vpop.permute.xlu1 %1669  ;;  %v1674_v28 = vpop.permute.xlu0 %1673 }
 0x483   :  { %v1720_v57 = vsel %vm1719_vm5, %v1718_v27, %v1670_v17 }
 0x484   :  { %v1722_v31 = vsel %vm1721_vm6, %v1720_v57, %v1674_v28 }
 0x486   :  { %v1678_v30 = vpop.permute.xlu1 %1677 }
 0x487   :  { %v1724_v13 = vsel %vm1723_vm7, %v1722_v31, %v1678_v30 }
 0x48a   :  { %v1686_v18 = vpop.permute.xlu1 %1685  ;;  %v1682_v60 = vpop.permute.xlu0 %1681 }
 0x48b   :  { %v1726_v35 = vsel %vm1725_vm8, %v1724_v13, %v1682_v60 }
 0x48c   :  { %v1728_v39 = vsel %vm1727_vm9, %v1726_v35, %v1686_v18 }
 0x48e   :  { %v1694_v36 = vpop.permute.xlu1 %1693  ;;  %v1690_v12 = vpop.permute.xlu0 %1689 }
 0x48f   :  { %v1730_v33 = vsel %vm1729_vm10, %v1728_v39, %v1690_v12 }
 0x490   :  { %v1732_v22 = vsel %vm1731_vm11, %v1730_v33, %v1694_v36 }
 0x492   :  { %v1702_v34 = vpop.permute.xlu1 %1701  ;;  %v1698_v15 = vpop.permute.xlu0 %1697 }
 0x493   :  { %v1734_v40 = vsel %vm1733_vm12, %v1732_v22, %v1698_v15 }
 0x494   :  { %v1736_v44 = vsel %vm1735_vm13, %v1734_v40, %v1702_v34 }
 0x496   :  { %v1710_v11 = vpop.permute.xlu1 %1709  ;;  %v1706_v47 = vpop.permute.xlu0 %1705 }
 0x497   :  { %v1738_v1 = vsel %vm1737_vm14, %v1736_v44, %v1706_v47 }
 0x498   :  { %v1740_v51 = vsel %vm1739_vm15, %v1738_v1, %v1710_v11 }
 0x499   :  { %1741 = vst [vmem:[#allocation8] sm:$0xff] %v1740_v51 }
 0x49a   :  { %2202 = shalt.err (!%p2199_p0)
}
 0x49b   :  { %s2203_s23 = scalar_lea.hbm %s2635_s5, 128 }
 0x49c   :  { %p2204_p1 = scmp.ne.s32.totalorder %s2635_s5, %s2203_s23  ;;  %p2207_p2 = scmp.lt.u32.totalorder %s2203_s23, %s2635_s5 }
 0x49e   :  { %p2209_p3 = pnand %p2207_p2, %p2204_p1 }
 0x4a0   :  { %2212 = shalt.err (!%p2209_p3)
}
 0x4a1   :  { %1751 = dma.vmem_to_hbm [thread:$0]  %s1749_s19, 128, %s2635_s5, [#allocation4]  }
 0x4a2   :  { %2217 = dma.done.wait [#allocation4], 128  }
 0x4a3   :  { %2218 = vsyncadd [#allocation4], 4294967168 }
 0x4a4   :  { %1755 = vsyncpa [#allocation3], 1 }
 0x4a5   :  { %1756 = vsyncpa [#allocation6], 1 }
 0x4a6   :  { %1757 = vsyncpa [#allocation4], 1 }

</bundles_post_ra>
